<compile_context>
chip_gen: v7x
topology: tpu7x:2x2x1
jax: 0.10.0
libtpu: 0.0.40
codegen_flags: <defaults>
</compile_context>

<pallas_src>
from functools import partial

import jax
import jax.numpy as jnp
from jax.experimental import pallas as pl
from jax.experimental.pallas import tpu as pltpu

K = 4          # conv kernel size
STRIDE = 2
PAD = 1
EPS = 1e-5
NEG_SLOPE = 0.01   # PyTorch LeakyReLU default

LANE = 128
SUBLANE = 8
TILE_M_TARGET = 512    # target rows (tile_ho * Wo) per Pass-1 grid step
PASS2_ROWS = 2048      # target rows per Pass-2 grid step (mem-bound pass)


def _round_up(x, m):
    return (x + m - 1) // m * m


def _vmem_limit_bytes():
    cap = 64 * 1024 * 1024               # conservative default (v7x physical)
    try:
        cap = int(pltpu.get_tpu_info().vmem_capacity_bytes)
    except Exception:
        pass
    return int(min(96 * 1024 * 1024, (cap * 3) // 4))


# ---------------- Pass 1: fused space-to-depth conv + BN partial stats -------
def _conv_stats_kernel(ho_valid, qa_ref, qb_ref, w_ref, conv_ref, stats_ref):
    """One (n, h-tile) grid step: 4 tap-group MXU matmuls + BN partial stats."""
    th = qa_ref.shape[1]           # output rows (ho) in this tile
    wq = qa_ref.shape[2]           # Wo + 1
    wo = wq - 1
    cp = conv_ref.shape[-1]

    q_lo = qa_ref[0]               # (th, wq, cq)  Q rows ho .. ho+th-1
    q_hi = qb_ref[0]               # (1,  wq, cq)  Q row  ho+th
    if th > 1:
        q_d1 = jnp.concatenate([q_lo[1:], q_hi], axis=0)   # rows shifted by +1
    else:
        q_d1 = q_hi

    acc = jnp.zeros((th * wo, cp), jnp.float32)
    for g in range(4):             # tap groups (dh, dw) in {0,1}^2
        dh, dw = g // 2, g % 2
        q_rows = q_d1 if dh else q_lo
        lhs = q_rows[:, dw:dw + wo, :].reshape(th * wo, -1)          # bf16
        acc = acc + jnp.dot(lhs, w_ref[g], preferred_element_type=jnp.float32)

    # Rows belonging to padded output positions (ho >= Ho) read real boundary
    # rows of Q; zero them so they don't pollute the batch statistics.
    r = jax.lax.broadcasted_iota(jnp.int32, (th * wo, 1), 0)
    valid_rows = (ho_valid - pl.program_id(1) * th) * wo
    acc = jnp.where(r < valid_rows, acc, 0.0)

    conv_ref[0] = acc.astype(conv_ref.dtype)
    # BN partials from the f32 accumulator (rows 0/1 of an 8-row slab).
    stats_ref[0, 0, 0:1, :] = jnp.sum(acc, axis=0, keepdims=True)
    stats_ref[0, 0, 1:2, :] = jnp.sum(acc * acc, axis=0, keepdims=True)


# ---------------- Pass 2: BN normalize (scale/shift) + LeakyReLU -------------
def _bn_lrelu_kernel(conv_ref, scale_ref, shift_ref, out_ref):
    y = conv_ref[...].astype(jnp.float32) * scale_ref[...] + shift_ref[...]
    out_ref[...] = jnp.where(y >= 0, y, NEG_SLOPE * y).astype(out_ref.dtype)


@jax.jit
def down_conv(x_nchw, w_oihw, bias, gamma, beta):
    """x: (N, C_in, H, W) f32 -> (N, C_out, H//2, W//2) f32.

    `bias` is accepted for API parity but unused: a per-channel constant added
    before training-mode BatchNorm is cancelled exactly by the mean
    subtraction (it WOULD be needed for eval-mode running statistics).
    """
    del bias
    N, Cin, H, W = x_nchw.shape
    Cout = w_oihw.shape[0]
    Ho = (H + 2 * PAD - K) // STRIDE + 1
    Wo = (W + 2 * PAD - K) // STRIDE + 1
    M_total = N * Ho * Wo

    Cp = _round_up(Cout, LANE)          # lane-dense output channels
    Cq = _round_up(4 * Cin, LANE)       # packed space-to-depth channels
    Cin_p = Cq // 4

    # h-tile sizing: ~TILE_M_TARGET rows per tile, >=4 grid steps if possible,
    # tile_m a multiple of the sublane count unless there is a single h-tile.
    max_th = max(1, TILE_M_TARGET // max(Wo, 1))
    min_ht = max(1, -(-4 // N))                      # ceil(4 / N)
    tile_ho = max(1, min(max_th, -(-Ho // min_ht)))
    nht = -(-Ho // tile_ho)
    while nht > 1 and (tile_ho * Wo) % SUBLANE:
        tile_ho += 1
        nht = -(-Ho // tile_ho)
    ho_pad = nht * tile_ho
    tile_m = tile_ho * Wo
    mr = ho_pad * Wo
    wq = Wo + 1

    # --- space-to-depth packed, zero-padded input (bf16, one fused XLA copy):
    #     Q[n, i, j, (ph*2+pw)*Cin_p + c] = x_pad[n, 2i+ph, 2j+pw, c]
    x_nhwc = jnp.transpose(x_nchw, (0, 2, 3, 1)).astype(jnp.bfloat16)
    x_p = jnp.pad(x_nhwc, ((0, 0),
                           (PAD, 2 * ho_pad + 1 - H),
                           (PAD, 2 * Wo + 1 - W),
                           (0, Cin_p - Cin)))
    q = x_p.reshape(N, ho_pad + 1, 2, wq, 2, Cin_p)
    q = jnp.transpose(q, (0, 1, 3, 2, 4, 5)).reshape(N, ho_pad + 1, wq, Cq)

    # --- weights regrouped to match Q's channel packing:
    #     Wg[2*dh+dw, (ph*2+pw)*Cin_p + c, o] = w[o, c, 2*dh+ph, 2*dw+pw]
    w_t = jnp.transpose(w_oihw, (2, 3, 1, 0))                    # (kh,kw,Cin,Cout)
    w_t = jnp.pad(w_t, ((0, 0), (0, 0), (0, Cin_p - Cin), (0, Cp - Cout)))
    w_t = w_t.reshape(2, 2, 2, 2, Cin_p, Cp)
    w_g = jnp.transpose(w_t, (0, 2, 1, 3, 4, 5)).reshape(4, 4 * Cin_p, Cp)
    w_g = w_g.astype(jnp.bfloat16)

    cparams = pltpu.CompilerParams(
        dimension_semantics=("parallel", "parallel"),   # v7x megacore; harmless elsewhere
        vmem_limit_bytes=_vmem_limit_bytes(),
    )
    cost = pl.CostEstimate(
        flops=2 * N * mr * (4 * Cq) * Cp,
        transcendentals=0,
        bytes_accessed=(q.size * 2) + (w_g.size * 2)
                       + (N * mr * Cp * 2) + (N * nht * 8 * Cp * 4),
    )

    conv_bf16, stats = pl.pallas_call(
        partial(_conv_stats_kernel, Ho),
        grid=(N, nht),
        in_specs=[
            # tile_ho rows of Q plus the single following row (dh=1 taps).
            pl.BlockSpec((1, tile_ho, wq, Cq), lambda n, i: (n, i, 0, 0)),
            pl.BlockSpec((1, 1, wq, Cq), lambda n, i: (n, (i + 1) * tile_ho, 0, 0)),
            # TODO(synk): add a contraction/Cout reduction grid axis (f32 VMEM
            # accumulator + pl.when init/finalize) and single-buffer the
            # invariant weight block for very large Cin/Cout on v7x (64 MiB VMEM).
            pl.BlockSpec((4, Cq, Cp), lambda n, i: (0, 0, 0)),
        ],
        out_specs=[
            pl.BlockSpec((1, tile_m, Cp), lambda n, i: (n, i, 0)),     # conv (bf16)
            pl.BlockSpec((1, 1, 8, Cp), lambda n, i: (n, i, 0, 0)),    # sum / sumsq
        ],
        out_shape=[
            jax.ShapeDtypeStruct((N, mr, Cp), jnp.bfloat16),
            jax.ShapeDtypeStruct((N, nht, 8, Cp), jnp.float32),
        ],
        compiler_params=cparams,
        cost_estimate=cost,
    )(q, q, w_g)

    # --- tiny cross-tile reduction + per-channel scale/shift (plain JAX) ---
    # Zero-masked padded rows / zero-padded channels contribute 0 to the sums,
    # so dividing by the true M is exact.
    sum_c = jnp.sum(stats[:, :, 0, :], axis=(0, 1))
    sumsq_c = jnp.sum(stats[:, :, 1, :], axis=(0, 1))
    mean = sum_c / M_total
    var = jnp.maximum(sumsq_c / M_total - mean * mean, 0.0)   # clamp cancellation
    inv_std = jax.lax.rsqrt(var + EPS)
    gamma_p = jnp.pad(gamma.astype(jnp.float32), (0, Cp - Cout))
    beta_p = jnp.pad(beta.astype(jnp.float32), (0, Cp - Cout))
    scale = (gamma_p * inv_std).reshape(1, Cp)
    shift = (beta_p - mean * gamma_p * inv_std).reshape(1, Cp)

    # --- Pass 2: mem-bound normalize+LeakyReLU; group h-tiles into big blocks.
    group = max(1, min(nht, PASS2_ROWS // max(tile_m, 1)))
    while nht % group:
        group -= 1
    tile_m2 = group * tile_m
    nht2 = nht // group

    out_flat = pl.pallas_call(
        _bn_lrelu_kernel,
        grid=(N, nht2),
        in_specs=[
            pl.BlockSpec((1, tile_m2, Cp), lambda n, i: (n, i, 0)),
            pl.BlockSpec((1, Cp), lambda n, i: (0, 0)),
            pl.BlockSpec((1, Cp), lambda n, i: (0, 0)),
        ],
        out_specs=pl.BlockSpec((1, tile_m2, Cp), lambda n, i: (n, i, 0)),
        out_shape=jax.ShapeDtypeStruct((N, mr, Cp), jnp.float32),
        compiler_params=cparams,
    )(conv_bf16, scale, shift)

    # TODO(synk): emit NCHW directly from Pass 2 (in-kernel transpose) to drop
    # this final XLA relayout pass of the output.
    out = out_flat[:, :Ho * Wo, :Cout].reshape(N, Ho, Wo, Cout)
    return jnp.transpose(out, (0, 3, 1, 2))           # back to NCHW


def down_conv_ref(x, w, bias, gamma, beta, conv_dtype=jnp.float32):
    """Pure-JAX reference mirroring the PyTorch module (training-mode BN)."""
    conv = jax.lax.conv_general_dilated(
        x.astype(conv_dtype), w.astype(conv_dtype),
        window_strides=(STRIDE, STRIDE), padding=((PAD, PAD), (PAD, PAD)),
        dimension_numbers=("NCHW", "OIHW", "NCHW"),
        preferred_element_type=jnp.float32)
    conv = conv + bias.reshape(1, -1, 1, 1)
    mean = jnp.mean(conv, axis=(0, 2, 3), keepdims=True)
    var = jnp.mean((conv - mean) ** 2, axis=(0, 2, 3), keepdims=True)
    y = (conv - mean) * jax.lax.rsqrt(var + EPS)
    y = y * gamma.reshape(1, -1, 1, 1) + beta.reshape(1, -1, 1, 1)
    return jnp.where(y >= 0, y, NEG_SLOPE * y)


if __name__ == "__main__":
    key = jax.random.PRNGKey(0)
    k_x, k_w, k_b, k_g, k_be = jax.random.split(key, 5)

    N, Cin, H, W = 2, 4, 16, 16
    Cout = 8

    x = jax.random.normal(k_x, (N, Cin, H, W), dtype=jnp.float32)
    w = 0.1 * jax.random.normal(k_w, (Cout, Cin, K, K), dtype=jnp.float32)
    b = 0.1 * jax.random.normal(k_b, (Cout,), dtype=jnp.float32)
    gamma = 1.0 + 0.1 * jax.random.normal(k_g, (Cout,), dtype=jnp.float32)
    beta = 0.1 * jax.random.normal(k_be, (Cout,), dtype=jnp.float32)

    out = jax.block_until_ready(down_conv(x, w, b, gamma, beta))
    assert out.shape == (N, Cout, H // 2, W // 2)

    # Check vs a reference whose conv uses the same bf16 MXU input precision
    # (kernel additionally stores conv activations in bf16 -> slightly looser).
    ref_bf16 = down_conv_ref(x, w, b, gamma, beta, conv_dtype=jnp.bfloat16)
    assert jnp.allclose(out, ref_bf16, atol=2e-2, rtol=2e-2), \
        float(jnp.max(jnp.abs(out - ref_bf16)))
    # Looser check vs the pure-f32 PyTorch-equivalent reference.
    ref_f32 = down_conv_ref(x, w, b, gamma, beta, conv_dtype=jnp.float32)
    assert jnp.allclose(out, ref_f32, atol=5e-2, rtol=5e-2), \
        float(jnp.max(jnp.abs(out - ref_f32)))

    print("KERNEL_OK")
</pallas_src>

<mosaic_0001>
module attributes {stable_mosaic.version = 11 : i64} {
  func.func @_conv_stats_kernel(%arg0: i32, %arg1: i32, %arg2: memref<1x4x9x128xbf16, #tpu.memory_space<vmem>>, %arg3: memref<1x1x9x128xbf16, #tpu.memory_space<vmem>>, %arg4: memref<4x128x128xbf16, #tpu.memory_space<vmem>>, %arg5: memref<1x32x128xbf16, #tpu.memory_space<vmem>>, %arg6: memref<1x1x8x128xf32, #tpu.memory_space<vmem>>) attributes {dimension_semantics = [#tpu.dimension_semantics<parallel>, #tpu.dimension_semantics<parallel>], iteration_bounds = array<i64: 2, 2>, scalar_prefetch = 0 : i64, scratch_operands = 0 : i64, tpu.core_type = #tpu.core_type<tc>, window_params = [{transform_indices = @transform_0, window_bounds = array<i64: 1, 4, 9, 128>}, {transform_indices = @transform_1, window_bounds = array<i64: 1, 1, 9, 128>}, {pipeline_mode = #tpu.pipeline_mode<synchronous>, transform_indices = @transform_2, window_bounds = array<i64: 4, 128, 128>}, {transform_indices = @transform_3, window_bounds = array<i64: 1, 32, 128>}, {transform_indices = @transform_4, window_bounds = array<i64: 1, 1, 8, 128>}]} {
    %c0 = arith.constant 0 : index
    %c0_0 = arith.constant 0 : index
    %c0_1 = arith.constant 0 : index
    %c0_2 = arith.constant 0 : index
    %0 = vector.load %arg2[%c0, %c0_0, %c0_1, %c0_2] : memref<1x4x9x128xbf16, #tpu.memory_space<vmem>>, vector<1x4x9x128xbf16>
    %1 = vector.shape_cast %0 : vector<1x4x9x128xbf16> to vector<4x9x128xbf16>
    %c0_3 = arith.constant 0 : index
    %c0_4 = arith.constant 0 : index
    %c0_5 = arith.constant 0 : index
    %c0_6 = arith.constant 0 : index
    %2 = vector.load %arg3[%c0_3, %c0_4, %c0_5, %c0_6] : memref<1x1x9x128xbf16, #tpu.memory_space<vmem>>, vector<1x1x9x128xbf16>
    %3 = vector.shape_cast %2 : vector<1x1x9x128xbf16> to vector<1x9x128xbf16>
    %4 = vector.extract_strided_slice %1 {offsets = [1, 0, 0], sizes = [3, 9, 128], strides = [1, 1, 1]} : vector<4x9x128xbf16> to vector<3x9x128xbf16>
    %5 = tpu.concatenate %4, %3 in 0 : vector<3x9x128xbf16>, vector<1x9x128xbf16> -> vector<4x9x128xbf16>
    %cst = arith.constant 0.000000e+00 : f32
    %6 = vector.broadcast %cst : f32 to vector<32x128xf32>
    %7 = vector.extract_strided_slice %1 {offsets = [0, 0, 0], sizes = [4, 8, 128], strides = [1, 1, 1]} : vector<4x9x128xbf16> to vector<4x8x128xbf16>
    %8 = vector.shape_cast %7 : vector<4x8x128xbf16> to vector<32x128xbf16>
    %c0_7 = arith.constant 0 : index
    %c0_8 = arith.constant 0 : index
    %c0_9 = arith.constant 0 : index
    %9 = vector.load %arg4[%c0_7, %c0_8, %c0_9] : memref<4x128x128xbf16, #tpu.memory_space<vmem>>, vector<1x128x128xbf16>
    %10 = vector.shape_cast %9 : vector<1x128x128xbf16> to vector<128x128xbf16>
    %cst_10 = arith.constant dense<0.000000e+00> : vector<32x128xf32>
    %11 = tpu.matmul %8, %10, %cst_10 {dimension_numbers = #tpu.dot_dimension_numbers<[1], [0], [0], [1], [0, 0, 1, 1], [], []>} : vector<32x128xbf16>, vector<128x128xbf16>, vector<32x128xf32> -> vector<32x128xf32>
    %12 = arith.addf %6, %11 : vector<32x128xf32>
    %13 = vector.extract_strided_slice %1 {offsets = [0, 1, 0], sizes = [4, 8, 128], strides = [1, 1, 1]} : vector<4x9x128xbf16> to vector<4x8x128xbf16>
    %14 = vector.shape_cast %13 : vector<4x8x128xbf16> to vector<32x128xbf16>
    %c1 = arith.constant 1 : index
    %c0_11 = arith.constant 0 : index
    %c0_12 = arith.constant 0 : index
    %15 = vector.load %arg4[%c1, %c0_11, %c0_12] : memref<4x128x128xbf16, #tpu.memory_space<vmem>>, vector<1x128x128xbf16>
    %16 = vector.shape_cast %15 : vector<1x128x128xbf16> to vector<128x128xbf16>
    %cst_13 = arith.constant dense<0.000000e+00> : vector<32x128xf32>
    %17 = tpu.matmul %14, %16, %cst_13 {dimension_numbers = #tpu.dot_dimension_numbers<[1], [0], [0], [1], [0, 0, 1, 1], [], []>} : vector<32x128xbf16>, vector<128x128xbf16>, vector<32x128xf32> -> vector<32x128xf32>
    %18 = arith.addf %12, %17 : vector<32x128xf32>
    %19 = vector.extract_strided_slice %5 {offsets = [0, 0, 0], sizes = [4, 8, 128], strides = [1, 1, 1]} : vector<4x9x128xbf16> to vector<4x8x128xbf16>
    %20 = vector.shape_cast %19 : vector<4x8x128xbf16> to vector<32x128xbf16>
    %c2 = arith.constant 2 : index
    %c0_14 = arith.constant 0 : index
    %c0_15 = arith.constant 0 : index
    %21 = vector.load %arg4[%c2, %c0_14, %c0_15] : memref<4x128x128xbf16, #tpu.memory_space<vmem>>, vector<1x128x128xbf16>
    %22 = vector.shape_cast %21 : vector<1x128x128xbf16> to vector<128x128xbf16>
    %cst_16 = arith.constant dense<0.000000e+00> : vector<32x128xf32>
    %23 = tpu.matmul %20, %22, %cst_16 {dimension_numbers = #tpu.dot_dimension_numbers<[1], [0], [0], [1], [0, 0, 1, 1], [], []>} : vector<32x128xbf16>, vector<128x128xbf16>, vector<32x128xf32> -> vector<32x128xf32>
    %24 = arith.addf %18, %23 : vector<32x128xf32>
    %25 = vector.extract_strided_slice %5 {offsets = [0, 1, 0], sizes = [4, 8, 128], strides = [1, 1, 1]} : vector<4x9x128xbf16> to vector<4x8x128xbf16>
    %26 = vector.shape_cast %25 : vector<4x8x128xbf16> to vector<32x128xbf16>
    %c3 = arith.constant 3 : index
    %c0_17 = arith.constant 0 : index
    %c0_18 = arith.constant 0 : index
    %27 = vector.load %arg4[%c3, %c0_17, %c0_18] : memref<4x128x128xbf16, #tpu.memory_space<vmem>>, vector<1x128x128xbf16>
    %28 = vector.shape_cast %27 : vector<1x128x128xbf16> to vector<128x128xbf16>
    %cst_19 = arith.constant dense<0.000000e+00> : vector<32x128xf32>
    %29 = tpu.matmul %26, %28, %cst_19 {dimension_numbers = #tpu.dot_dimension_numbers<[1], [0], [0], [1], [0, 0, 1, 1], [], []>} : vector<32x128xbf16>, vector<128x128xbf16>, vector<32x128xf32> -> vector<32x128xf32>
    %30 = arith.addf %24, %29 : vector<32x128xf32>
    %31 = tpu.iota {dimensions = array<i32: 0>} : vector<32x1xi32>
    %c4_i32 = arith.constant 4 : i32
    %32 = arith.muli %arg1, %c4_i32 : i32
    %c8_i32 = arith.constant 8 : i32
    %33 = arith.subi %c8_i32, %32 : i32
    %c8_i32_20 = arith.constant 8 : i32
    %34 = arith.muli %33, %c8_i32_20 : i32
    %35 = vector.broadcast %34 : i32 to vector<32x1xi32>
    %36 = arith.cmpi slt, %31, %35 : vector<32x1xi32>
    %cst_21 = arith.constant 0.000000e+00 : f32
    %37 = vector.shape_cast %36 : vector<32x1xi1> to vector<32x1xi1>
    %38 = vector.broadcast %37 : vector<32x1xi1> to vector<32x128xi1>
    %39 = vector.broadcast %cst_21 : f32 to vector<32x128xf32>
    %40 = arith.select %38, %30, %39 : vector<32x128xi1>, vector<32x128xf32>
    %41 = arith.truncf %40 : vector<32x128xf32> to vector<32x128xbf16>
    %c0_22 = arith.constant 0 : index
    %c0_23 = arith.constant 0 : index
    %c0_24 = arith.constant 0 : index
    %42 = vector.load %arg5[%c0_22, %c0_23, %c0_24] : memref<1x32x128xbf16, #tpu.memory_space<vmem>>, vector<1x32x128xbf16>
    %43 = vector.shape_cast %42 : vector<1x32x128xbf16> to vector<32x128xbf16>
    %44 = vector.shape_cast %41 : vector<32x128xbf16> to vector<1x32x128xbf16>
    tpu.vector_store %arg5[%c0_22, %c0_23, %c0_24], %44 {strides = array<i32>} : memref<1x32x128xbf16, #tpu.memory_space<vmem>>, vector<1x32x128xbf16>,
    %cst_25 = arith.constant dense<0.000000e+00> : vector<128xf32>
    %45 = vector.multi_reduction <add>, %40, %cst_25 [0] : vector<32x128xf32> to vector<128xf32>
    %46 = vector.shape_cast %45 : vector<128xf32> to vector<1x128xf32>
    %c0_26 = arith.constant 0 : index
    %c0_27 = arith.constant 0 : index
    %c0_28 = arith.constant 0 : index
    %c0_29 = arith.constant 0 : index
    %47 = vector.load %arg6[%c0_26, %c0_27, %c0_28, %c0_29] : memref<1x1x8x128xf32, #tpu.memory_space<vmem>>, vector<1x1x1x128xf32>
    %48 = vector.shape_cast %47 : vector<1x1x1x128xf32> to vector<1x128xf32>
    %49 = vector.shape_cast %46 : vector<1x128xf32> to vector<1x1x1x128xf32>
    tpu.vector_store %arg6[%c0_26, %c0_27, %c0_28, %c0_29], %49 {strides = array<i32>} : memref<1x1x8x128xf32, #tpu.memory_space<vmem>>, vector<1x1x1x128xf32>,
    %50 = arith.mulf %40, %40 : vector<32x128xf32>
    %cst_30 = arith.constant dense<0.000000e+00> : vector<128xf32>
    %51 = vector.multi_reduction <add>, %50, %cst_30 [0] : vector<32x128xf32> to vector<128xf32>
    %52 = vector.shape_cast %51 : vector<128xf32> to vector<1x128xf32>
    %c0_31 = arith.constant 0 : index
    %c0_32 = arith.constant 0 : index
    %c1_33 = arith.constant 1 : index
    %c0_34 = arith.constant 0 : index
    %53 = vector.load %arg6[%c0_31, %c0_32, %c1_33, %c0_34] : memref<1x1x8x128xf32, #tpu.memory_space<vmem>>, vector<1x1x1x128xf32>
    %54 = vector.shape_cast %53 : vector<1x1x1x128xf32> to vector<1x128xf32>
    %55 = vector.shape_cast %52 : vector<1x128xf32> to vector<1x1x1x128xf32>
    tpu.vector_store %arg6[%c0_31, %c0_32, %c1_33, %c0_34], %55 {strides = array<i32>} : memref<1x1x8x128xf32, #tpu.memory_space<vmem>>, vector<1x1x1x128xf32>,
    return
  }
  func.func @transform_0(%arg0: i32, %arg1: i32) -> (i32, i32, i32, i32) {
    %c0_i32 = arith.constant 0 : i32
    %c0_i32_0 = arith.constant 0 : i32
    %c0_i32_1 = arith.constant 0 : i32
    return %arg0, %arg1, %c0_i32, %c0_i32_0 : i32, i32, i32, i32
  }
  func.func @transform_1(%arg0: i32, %arg1: i32) -> (i32, i32, i32, i32) {
    %c1_i32 = arith.constant 1 : i32
    %0 = arith.addi %arg1, %c1_i32 : i32
    %c4_i32 = arith.constant 4 : i32
    %1 = arith.muli %0, %c4_i32 : i32
    %c0_i32 = arith.constant 0 : i32
    %c0_i32_0 = arith.constant 0 : i32
    %c0_i32_1 = arith.constant 0 : i32
    return %arg0, %1, %c0_i32, %c0_i32_0 : i32, i32, i32, i32
  }
  func.func @transform_2(%arg0: i32, %arg1: i32) -> (i32, i32, i32) {
    %c0_i32 = arith.constant 0 : i32
    %c0_i32_0 = arith.constant 0 : i32
    %c0_i32_1 = arith.constant 0 : i32
    %c0_i32_2 = arith.constant 0 : i32
    return %c0_i32, %c0_i32_0, %c0_i32_1 : i32, i32, i32
  }
  func.func @transform_3(%arg0: i32, %arg1: i32) -> (i32, i32, i32) {
    %c0_i32 = arith.constant 0 : i32
    %c0_i32_0 = arith.constant 0 : i32
    return %arg0, %arg1, %c0_i32 : i32, i32, i32
  }
  func.func @transform_4(%arg0: i32, %arg1: i32) -> (i32, i32, i32, i32) {
    %c0_i32 = arith.constant 0 : i32
    %c0_i32_0 = arith.constant 0 : i32
    %c0_i32_1 = arith.constant 0 : i32
    return %arg0, %arg1, %c0_i32, %c0_i32_0 : i32, i32, i32, i32
  }
}

module attributes {stable_mosaic.version = 11 : i64} {
  func.func @_bn_lrelu_kernel(%arg0: i32, %arg1: i32, %arg2: memref<1x64x128xbf16, #tpu.memory_space<vmem>>, %arg3: memref<1x128xf32, #tpu.memory_space<vmem>>, %arg4: memref<1x128xf32, #tpu.memory_space<vmem>>, %arg5: memref<1x64x128xf32, #tpu.memory_space<vmem>>) attributes {dimension_semantics = [#tpu.dimension_semantics<parallel>, #tpu.dimension_semantics<parallel>], iteration_bounds = array<i64: 2, 1>, scalar_prefetch = 0 : i64, scratch_operands = 0 : i64, tpu.core_type = #tpu.core_type<tc>, window_params = [{transform_indices = @transform_0, window_bounds = array<i64: 1, 64, 128>}, {pipeline_mode = #tpu.pipeline_mode<synchronous>, transform_indices = @transform_1, window_bounds = array<i64: 1, 128>}, {pipeline_mode = #tpu.pipeline_mode<synchronous>, transform_indices = @transform_2, window_bounds = array<i64: 1, 128>}, {transform_indices = @transform_3, window_bounds = array<i64: 1, 64, 128>}]} {
    %c0 = arith.constant 0 : index
    %c0_0 = arith.constant 0 : index
    %c0_1 = arith.constant 0 : index
    %0 = vector.load %arg2[%c0, %c0_0, %c0_1] : memref<1x64x128xbf16, #tpu.memory_space<vmem>>, vector<1x64x128xbf16>
    %1 = arith.extf %0 : vector<1x64x128xbf16> to vector<1x64x128xf32>
    %c0_2 = arith.constant 0 : index
    %c0_3 = arith.constant 0 : index
    %2 = vector.load %arg3[%c0_2, %c0_3] : memref<1x128xf32, #tpu.memory_space<vmem>>, vector<1x128xf32>
    %3 = vector.shape_cast %2 : vector<1x128xf32> to vector<1x1x128xf32>
    %4 = vector.broadcast %3 : vector<1x1x128xf32> to vector<1x64x128xf32>
    %5 = arith.mulf %1, %4 : vector<1x64x128xf32>
    %c0_4 = arith.constant 0 : index
    %c0_5 = arith.constant 0 : index
    %6 = vector.load %arg4[%c0_4, %c0_5] : memref<1x128xf32, #tpu.memory_space<vmem>>, vector<1x128xf32>
    %7 = vector.shape_cast %6 : vector<1x128xf32> to vector<1x1x128xf32>
    %8 = vector.broadcast %7 : vector<1x1x128xf32> to vector<1x64x128xf32>
    %9 = arith.addf %5, %8 : vector<1x64x128xf32>
    %cst = arith.constant 0.000000e+00 : f32
    %10 = vector.broadcast %cst : f32 to vector<1x64x128xf32>
    %11 = arith.cmpf oge, %9, %10 : vector<1x64x128xf32>
    %cst_6 = arith.constant 0.00999999977 : f32
    %12 = vector.broadcast %cst_6 : f32 to vector<1x64x128xf32>
    %13 = arith.mulf %12, %9 : vector<1x64x128xf32>
    %14 = arith.select %11, %9, %13 : vector<1x64x128xi1>, vector<1x64x128xf32>
    %c0_7 = arith.constant 0 : index
    %c0_8 = arith.constant 0 : index
    %c0_9 = arith.constant 0 : index
    %15 = vector.load %arg5[%c0_7, %c0_8, %c0_9] : memref<1x64x128xf32, #tpu.memory_space<vmem>>, vector<1x64x128xf32>
    tpu.vector_store %arg5[%c0_7, %c0_8, %c0_9], %14 {strides = array<i32>} : memref<1x64x128xf32, #tpu.memory_space<vmem>>, vector<1x64x128xf32>,
    return
  }
  func.func @transform_0(%arg0: i32, %arg1: i32) -> (i32, i32, i32) {
    %c0_i32 = arith.constant 0 : i32
    %c0_i32_0 = arith.constant 0 : i32
    return %arg0, %arg1, %c0_i32 : i32, i32, i32
  }
  func.func @transform_1(%arg0: i32, %arg1: i32) -> (i32, i32) {
    %c0_i32 = arith.constant 0 : i32
    %c0_i32_0 = arith.constant 0 : i32
    %c0_i32_1 = arith.constant 0 : i32
    return %c0_i32, %c0_i32_0 : i32, i32
  }
  func.func @transform_2(%arg0: i32, %arg1: i32) -> (i32, i32) {
    %c0_i32 = arith.constant 0 : i32
    %c0_i32_0 = arith.constant 0 : i32
    %c0_i32_1 = arith.constant 0 : i32
    return %c0_i32, %c0_i32_0 : i32, i32
  }
  func.func @transform_3(%arg0: i32, %arg1: i32) -> (i32, i32, i32) {
    %c0_i32 = arith.constant 0 : i32
    %c0_i32_0 = arith.constant 0 : i32
    return %arg0, %arg1, %c0_i32 : i32, i32, i32
  }
}

</mosaic_0001>

<bundles_post_ra>
// kernel: down_conv.3
= control target key start
LH: loop header
LB: loop body
LE: loop exit
PB: predicated region body
PF: predicated region fallthrough
CT: control target
= control target key end

     0   :  { %s477_s12 = smov 0   ;;  %s479_s13 = smov 0   ;;  %s530_s0 = inlined_call_operand.vmem [shape: bf16[2,64,128], index: 0, kind: input, shape index: {}]   ;;  %s531_s1 = inlined_call_operand.vmem [shape: f32[1,128], index: 1, kind: input, shape index: {}]   ;;  %s532_s2 = inlined_call_operand.vmem [shape: f32[1,128], index: 2, kind: input, shape index: {}]   ;;  %s533_s3 = inlined_call_operand.vmem [shape: f32[2,64,128], index: 3, kind: output, shape index: {}]  }
   0x1   :  { %s481_s14 = smov 0  }
   0x2 LB: > { %s25_s15 = sadd.s32 1, %s451_s13  ;;  %p379_p0 = scmp.ge.s32.totalorder %s455_s14, 1  ;;  %s455_s14 = sphi %s481_s14, %s13_s14   ;;  %s451_s13 = sphi %s479_s13, %s535_s13   ;;  %s447_s12 = sphi %s477_s12, %s534_s12  }
   0x3   : > { %p27_p1 = scmp.ge.s32.totalorder %s25_s15, 2  ;;  %p158_p2 = scmp.lt.s32.totalorder %s455_s14, 3 }
   0x5   : > { %s537_s15 = smov (%p27_p1, %s25_s15), 0  ;;  %p159_p3 = pnand %p379_p0, %p158_p2 }
   0x6   : > { %p191_p4 = scmp.lt.s32.totalorder (!%p159_p3), %s447_s12, 1  ;;  %v384_v0 = vld [vmem:[%s531_s1] ss:$0 sm:$0xff] (!%p159_p3) }
   0x7   : > { %162 = sbr.rel (%p159_p3) target bundleno = 33 (0x21), region = 32  ;;  %v385_v9 = vld [vmem:[%s532_s2] ss:$0 sm:$0xff] (!%p159_p3) }
   0xe   : > { %s539_s12 = smov (!%p191_p4, %s447_s12), 1 }
   0xf   : > { %s388_s16 = sshll.u32 %s539_s12, 5  ;;  %s389_s24 = sshll.u32 %s539_s12, 6 }
  0x10   : > { %s198_s19 = scalar_lea.vmem %s530_s0, %s388_s16  ;;  %s511_s27 = scalar_lea.vmem %s533_s3, %s389_s24 }
  0x11   : > { %v391_v1 = vld [vmem:[%s198_s19] sm:$0xff]   ;;  %v406_v2 = vld [vmem:[%s198_s19 + $0x8] sm:$0xff]   ;;  %v407_v3 = vld [vmem:[%s198_s19 + $0x10] sm:$0xff]  }
  0x12   : > { %v392_v4 = vunpack.c.l.bf16 %v391_v1  ;;  %v393_v5 = vunpack.c.h.bf16 %v391_v1  ;;  %v396_v6 = vunpack.c.l.bf16 %v406_v2  ;;  %v397_v7 = vunpack.c.h.bf16 %v406_v2  ;;  %v408_v8 = vld [vmem:[%s198_s19 + $0x18] sm:$0xff]  }
  0x13   : > { %v400_v10 = vunpack.c.l.bf16 %v407_v3  ;;  %v401_v11 = vunpack.c.h.bf16 %v407_v3  ;;  %v404_v12 = vunpack.c.l.bf16 %v408_v8  ;;  %v405_v13 = vunpack.c.h.bf16 %v408_v8 }
  0x14   : > { %v233_v14 = vmul.f32 %v392_v4, %v384_v0  ;;  %v234_v15 = vmul.f32 %v393_v5, %v384_v0  ;;  %v235_v16 = vmul.f32 %v396_v6, %v384_v0  ;;  %v236_v17 = vmul.f32 %v397_v7, %v384_v0 }
  0x15   : > { %v237_v18 = vmul.f32 %v400_v10, %v384_v0  ;;  %v238_v19 = vmul.f32 %v401_v11, %v384_v0  ;;  %v239_v20 = vmul.f32 %v404_v12, %v384_v0  ;;  %v240_v21 = vmul.f32 %v405_v13, %v384_v0 }
  0x16   : > { %v248_v22 = vadd.f32 %v385_v9, %v233_v14  ;;  %v249_v23 = vadd.f32 %v385_v9, %v234_v15  ;;  %v250_v24 = vadd.f32 %v385_v9, %v235_v16  ;;  %v251_v25 = vadd.f32 %v385_v9, %v236_v17 }
  0x17   : > { %v252_v26 = vadd.f32 %v385_v9, %v237_v18  ;;  %v253_v27 = vadd.f32 %v385_v9, %v238_v19  ;;  %v254_v28 = vadd.f32 %v385_v9, %v239_v20  ;;  %v255_v29 = vadd.f32 %v385_v9, %v240_v21 }
  0x18   : > { %vm256_vm0 = vcmp.ge.f32.partialorder %v248_v22, 0.0  ;;  %v264_v30 = vmul.f32 0.01, %v248_v22  ;;  %vm257_vm1 = vcmp.ge.f32.partialorder %v249_v23, 0.0  ;;  %v265_v31 = vmul.f32 0.01, %v249_v23 }
  0x19   : > { %vm258_vm2 = vcmp.ge.f32.partialorder %v250_v24, 0.0  ;;  %v266_v32 = vmul.f32 0.01, %v250_v24  ;;  %vm259_vm3 = vcmp.ge.f32.partialorder %v251_v25, 0.0  ;;  %v267_v33 = vmul.f32 0.01, %v251_v25 }
  0x1a   : > { %v272_v34 = vsel %vm256_vm0, %v248_v22, %v264_v30  ;;  %v273_v35 = vsel %vm257_vm1, %v249_v23, %v265_v31  ;;  %vm260_vm4 = vcmp.ge.f32.partialorder %v252_v26, 0.0  ;;  %v268_v36 = vmul.f32 0.01, %v252_v26 }
  0x1b   : > { %280 = vst [vmem:[%s511_s27] sm:$0xff] %v272_v34  ;;  %281 = vst [vmem:[%s511_s27 + $0x8] sm:$0xff] %v273_v35  ;;  %v274_v37 = vsel %vm258_vm2, %v250_v24, %v266_v32  ;;  %v275_v38 = vsel %vm259_vm3, %v251_v25, %v267_v33  ;;  %vm261_vm5 = vcmp.ge.f32.partialorder %v253_v27, 0.0  ;;  %v269_v39 = vmul.f32 0.01, %v253_v27 }
  0x1c   : > { %282 = vst [vmem:[%s511_s27 + $0x10] sm:$0xff] %v274_v37  ;;  %283 = vst [vmem:[%s511_s27 + $0x18] sm:$0xff] %v275_v38  ;;  %v276_v40 = vsel %vm260_vm4, %v252_v26, %v268_v36  ;;  %vm262_vm6 = vcmp.ge.f32.partialorder %v254_v28, 0.0  ;;  %v270_v41 = vmul.f32 0.01, %v254_v28  ;;  %vm263_vm7 = vcmp.ge.f32.partialorder %v255_v29, 0.0 }
  0x1d   : > { %284 = vst [vmem:[%s511_s27 + $0x20] sm:$0xff] %v276_v40  ;;  %v277_v42 = vsel %vm261_vm5, %v253_v27, %v269_v39  ;;  %v271_v43 = vmul.f32 0.01, %v255_v29 }
  0x1e   : > { %285 = vst [vmem:[%s511_s27 + $0x28] sm:$0xff] %v277_v42  ;;  %v278_v44 = vsel %vm262_vm6, %v254_v28, %v270_v41 }
  0x1f   : > { %286 = vst [vmem:[%s511_s27 + $0x30] sm:$0xff] %v278_v44  ;;  %v279_v45 = vsel %vm263_vm7, %v255_v29, %v271_v43 }
  0x20   : > { %287 = vst [vmem:[%s511_s27 + $0x38] sm:$0xff] %v279_v45 }
  0x21 PF: > { %s13_s14 = sadd.s32 1, %s455_s14   ;;  %s534_s12 = smov %s451_s13 }
  0x22   : > { %p10_p5 = scmp.ge.s32.totalorder %s13_s14, 4   ;;  %s535_s13 = smov %s537_s15 }
  0x24   :  { %12 = sbr.rel (!%p10_p5) target bundleno = 2 (0x2), region = 62 }

// kernel: down_conv.2
= control target key start
LH: loop header
LB: loop body
LE: loop exit
PB: predicated region body
PF: predicated region fallthrough
CT: control target
= control target key end

     0   :  { %s1550_s15 = smov 0   ;;  %s1552_s16 = smov 0   ;;  %s1784_s0 = inlined_call_operand.vmem [shape: bf16[2,9,9,128], index: 0, kind: input, shape index: {}, may-alias: {0,1}]   ;;  %s1785_s1 = inlined_call_operand.vmem [shape: bf16[2,9,9,128], index: 1, kind: input, shape index: {}, may-alias: {0,1}]   ;;  %s1786_s2 = inlined_call_operand.vmem [shape: bf16[4,128,128], index: 2, kind: input, shape index: {}]   ;;  %s1787_s3 = inlined_call_operand.vmem [shape: bf16[2,64,128], index: 3, kind: output, shape index: {0}]   ;;  %s1788_s4 = inlined_call_operand.vmem [shape: f32[2,2,8,128], index: 4, kind: output, shape index: {1}]  }
   0x1   :  { %s1554_s17 = smov 0   ;;  %s1556_s18 = smov 0  }
   0x2   :  { %s1558_s19 = smov 0  }
   0x3 LB: > { %s24_s20 = sadd.s32 1, %s1515_s17  ;;  %s27_s21 = sadd.s32 1, %s1519_s18  ;;  %s1523_s19 = sphi %s1558_s19, %s15_s19   ;;  %s1519_s18 = sphi %s1556_s18, %s1794_s18   ;;  %s1515_s17 = sphi %s1554_s17, %s1793_s17   ;;  %s1511_s16 = sphi %s1552_s16, %s1792_s16   ;;  %s1507_s15 = sphi %s1550_s15, %s1791_s15  }
   0x4   : > { %p25_p0 = scmp.ge.s32.totalorder %s24_s20, 2  ;;  %p1148_p1 = scmp.ge.s32.totalorder %s1523_s19, 1 }
   0x5   : > { %p223_p2 = scmp.lt.s32.totalorder %s1523_s19, 5 }
   0x6   : > { %s1796_s20 = smov (%p25_p0, %s24_s20), 0  ;;  %s1798_s21 = smov (!%p25_p0, %s27_s21), %s1519_s18 }
   0x7   : > { %p224_p3 = pnand %p1148_p1, %p223_p2  ;;  %p29_p4 = scmp.ge.s32.totalorder %s1798_s21, 2 }
   0x8   : > { %v1450_v0 = vld [vmem:[%s1786_s2 + $0x40] sm:$0xff] (!%p224_p3)   ;;  %s1586_s24 = sshll.u32 (!%p224_p3), %s1507_s15, 2  ;;  %p288_p5 = scmp.lt.s32.totalorder (!%p224_p3), %s1511_s16, 1  ;;  %v1452_v2 = vld [vmem:[%s1786_s2 + $0x48] sm:$0xff] (!%p224_p3)   ;;  %v1454_v4 = vld [vmem:[%s1786_s2 + $0x50] sm:$0xff] (!%p224_p3)  }
   0x9   : > { %s1800_s21 = smov (%p29_p4, %s1798_s21), 0  ;;  %227 = sbr.rel (%p224_p3) target bundleno = 314 (0x13a), region = 32 }
   0xa   : > { %v1451_v1 = vld [vmem:[%s1786_s2 + $0x80] sm:$0xff] (!%p224_p3)   ;;  %1317 = vmatprep.subr.bf16.mxu1 (!%p224_p3), %v1450_v0  ;;  %p290_p6 = scmp.lt.s32.totalorder (!%p224_p3), %s1586_s24, 8  ;;  %v1453_v3 = vld [vmem:[%s1786_s2 + $0x88] sm:$0xff] (!%p224_p3)   ;;  %v1455_v5 = vld [vmem:[%s1786_s2 + $0x90] sm:$0xff] (!%p224_p3)   ;;  %s1261_s13 = sadd.s32 (!%p224_p3), 4, %s1586_s24 }
   0xb   : > { %1357 = vmatprep.subr.bf16.mxu0 (!%p224_p3), %v1451_v1  ;;  %1318 = vmatpush3.bf16.msra.mxu1 (!%p224_p3), %v1450_v0  ;;  %v1456_v6 = vld [vmem:[%s1786_s2 + $0x58] sm:$0xff] (!%p224_p3)   ;;  %p307_p7 = scmp.lt.s32.totalorder (!%p224_p3), %s1261_s13, 8  ;;  %v1458_v8 = vld [vmem:[%s1786_s2 + $0x60] sm:$0xff] (!%p224_p3)   ;;  %v1460_v10 = vld [vmem:[%s1786_s2 + $0x68] sm:$0xff] (!%p224_p3)   ;;  %vm361_vm0 = vsmask.f32 (!%p224_p3), 3328 }
   0xc   : > { %1358 = vmatpush3.bf16.msra.mxu0 (!%p224_p3), %v1451_v1  ;;  %1319 = vmatprep.subr.bf16.mxu1 (!%p224_p3), %v1452_v2  ;;  %v1457_v7 = vld [vmem:[%s1786_s2 + $0x98] sm:$0xff] (!%p224_p3)   ;;  %v1459_v9 = vld [vmem:[%s1786_s2 + $0xa0] sm:$0xff] (!%p224_p3)   ;;  %v1461_v11 = vld [vmem:[%s1786_s2 + $0xa8] sm:$0xff] (!%p224_p3)   ;;  %vm362_vm1 = vsmask.f32 (!%p224_p3), 7440  ;;  %s918_s30 = ssub.s32 (!%p224_p3), 8, %s1586_s24 }
   0xd   : > { %1359 = vmatprep.subr.bf16.mxu0 (!%p224_p3), %v1453_v3  ;;  %v1462_v18 = vld [vmem:[%s1786_s2 + $0x70] sm:$0xff] (!%p224_p3)   ;;  %vm1667_vm2 = vmor (!%p224_p3), %vm361_vm0, %vm362_vm1  ;;  %v1464_v43 = vld [vmem:[%s1786_s2 + $0x78] sm:$0xff] (!%p224_p3)   ;;  %p319_p8 = scmp.lt.s32.totalorder (!%p224_p3), %s1586_s24, 7  ;;  %s1249_s5 = sshll.u32 (!%p224_p3), %s918_s30, 3 }
   0xe   : > { %v1463_v29 = vld [vmem:[%s1786_s2 + $0xb0] sm:$0xff] (!%p224_p3)   ;;  %v1465_v44 = vld [vmem:[%s1786_s2 + $0xb8] sm:$0xff] (!%p224_p3)   ;;  %v1466_v55 = vld [vmem:[%s1786_s2] sm:$0xff] (!%p224_p3)   ;;  %p328_p9 = scmp.lt.s32.totalorder (!%p224_p3), %s1507_s15, 1 }
   0xf   : > { %1320 = vmatpush3.bf16.msra.mxu1 (!%p224_p3), %v1452_v2  ;;  %v1468_v60 = vld [vmem:[%s1786_s2 + $0xc0] sm:$0xff] (!%p224_p3)   ;;  %v1470_v2 = vld [vmem:[%s1786_s2 + $0xc8] sm:$0xff] (!%p224_p3)  }
  0x10   : > { %s1802_s16 = smov (!%p288_p5, %s1511_s16), 1  ;;  %1360 = vmatpush3.bf16.msra.mxu0 %v1453_v3  ;;  %1321 = vmatprep.subr.bf16.mxu1 %v1454_v4  ;;  %s1804_s13 = smov (!%p307_p7, %s1261_s13), 8 }
  0x11   : > { %s291_s7 = scalar_select %p290_p6, %s1586_s24, 8  ;;  %1361 = vmatprep.subr.bf16.mxu0 %v1455_v5 }
  0x12   : > { %s1409_s10 = smul.u32 18, %s1802_s16  ;;  %s1153_s14 = sshll.u32 %s1804_s13, 1 }
  0x13   : > { %s1150_s11 = sshll.u32 %s291_s7, 1  ;;  %1322 = vmatpush3.bf16.msra.mxu1 %v1454_v4  ;;  %s1806_s24 = smov (!%p319_p8, %s1586_s24), 7 }
  0x14   : > { %s294_s12 = sadd.s32 %s1409_s10, %s1150_s11  ;;  %1362 = vmatpush3.bf16.msra.mxu0 %v1455_v5  ;;  %1323 = vmatprep.subr.bf16.mxu1 %v1456_v6  ;;  %s1658_s13 = sadd.s32 %s1409_s10, %s1153_s14  ;;  %v1469_v5 = vld [vmem:[%s1786_s2 + $0x8] sm:$0xff]  }
  0x15   : > { %s1151_s26 = sshll.u32 %s294_s12, 2  ;;  %1363 = vmatprep.subr.bf16.mxu0 %v1457_v7  ;;  %s1154_s10 = sshll.u32 %s1658_s13, 2 }
  0x16   : > { %s1628_s7 = scalar_lea.vmem %s1784_s0, %s1151_s26  ;;  %s1687_s8 = scalar_lea.vmem %s1785_s1, %s1154_s10 }
  0x17   : > { %1324 = vmatpush3.bf16.msra.mxu1 %v1456_v6  ;;  %v1638_v12 = vld [vmem:[%s1628_s7] sm:$0xf]  ;;  %v336_v13 = vld [vmem:[%s1628_s7 + $0x4] sm:$0x1]  ;;  %v1642_v14 = vld [vmem:[%s1628_s7 + $0x8] sm:$0xf] }
  0x18   : > { %1364 = vmatpush3.bf16.msra.mxu0 %v1457_v7  ;;  %1325 = vmatprep.subr.bf16.mxu1 %v1458_v8  ;;  %v338_v15 = vld [vmem:[%s1628_s7 + $0xc] sm:$0x1]  ;;  %v1646_v16 = vld [vmem:[%s1628_s7 + $0x10] sm:$0xf]  ;;  %v340_v17 = vld [vmem:[%s1628_s7 + $0x14] sm:$0x1]  ;;  %v1186_v6 = vcombine.low %v1638_v12, %v1642_v14 }
  0x19   : > { %1365 = vmatprep.subr.bf16.mxu0 %v1459_v9  ;;  %v365_v19 = vshrl.u32 %v1638_v12, 16  ;;  %v368_v20 = vshll.u32 %v1638_v12, 16  ;;  %v374_v21 = vshll.u32 %v336_v13, 16  ;;  %v379_v22 = vshrl.u32 %v1642_v14, 16  ;;  %v1675_v41 = vld [vmem:[%s1628_s7 + $0x18] sm:$0xf] }
  0x1a   : > { %v382_v23 = vshll.u32 %v1642_v14, 16  ;;  %v388_v24 = vshll.u32 %v338_v15, 16  ;;  %v393_v27 = vshrl.u32 %v1646_v16, 16  ;;  %v396_v28 = vshll.u32 %v1646_v16, 16  ;;  %v342_v42 = vld [vmem:[%s1628_s7 + $0x1c] sm:$0x1] }
  0x1b   : > { %1326 = vmatpush3.bf16.msra.mxu1 %v1458_v8  ;;  %v367_v25 = vrot.slane %v365_v19, 4  ;;  %v370_v26 = vrot.slane %v368_v20, 5  ;;  %v376_v30 = vrot.slane %v374_v21, 5  ;;  %v381_v31 = vrot.slane %v379_v22, 4  ;;  %v343_v59 = vld [vmem:[%s1687_s8] sm:$0xf] }
  0x1c   : > { %1366 = vmatpush3.bf16.msra.mxu0 %v1459_v9  ;;  %1327 = vmatprep.subr.bf16.mxu1 %v1460_v10  ;;  %v384_v32 = vrot.slane %v382_v23, 5  ;;  %v390_v33 = vrot.slane %v388_v24, 5  ;;  %v395_v36 = vrot.slane %v393_v27, 4  ;;  %v398_v37 = vrot.slane %v396_v28, 5  ;;  %v1472_v8 = vld [vmem:[%s1786_s2 + $0xd0] sm:$0xff]   ;;  %v1475_v15 = vld [vmem:[%s1786_s2 + $0x20] sm:$0xff]  }
  0x1d   : > { %1367 = vmatprep.subr.bf16.mxu0 %v1461_v11  ;;  %v371_v35 = vor.u32 %v370_v26, %v367_v25  ;;  %v402_v38 = vshll.u32 %v340_v17, 16  ;;  %v1212_v40 = vcombine.low %v1642_v14, %v1646_v16  ;;  %v407_v48 = vshrl.u32 %v1675_v41, 16  ;;  %v1471_v9 = vld [vmem:[%s1786_s2 + $0x10] sm:$0xff]   ;;  %v1476_v14 = vld [vmem:[%s1786_s2 + $0xe0] sm:$0xff]   ;;  %v1478_v20 = vld [vmem:[%s1786_s2 + $0xe8] sm:$0xff]   ;;  %s1156_s6 = sshll.u32 %s1802_s16, 3 }
  0x1e   : > { %v385_v39 = vor.u32 %v384_v32, %v381_v31  ;;  %v399_v46 = vor.u32 %v398_v37, %v395_v36  ;;  %v410_v49 = vshll.u32 %v1675_v41, 16  ;;  %v416_v50 = vshll.u32 %v342_v42, 16  ;;  %v344_v19 = vld [vmem:[%s1687_s8 + $0x4] sm:$0x1]  ;;  %v1477_v21 = vld [vmem:[%s1786_s2 + $0x28] sm:$0xff]   ;;  %v1480_v24 = vld [vmem:[%s1786_s2 + $0xf0] sm:$0xff]   ;;  %s322_s7 = sadd.s32 %s1156_s6, %s1806_s24 }
  0x1f   : > { %1328 = vmatpush3.bf16.msra.mxu1 %v1460_v10  ;;  %v372_v45 = vrot.slane %v371_v35, 4  ;;  %1373 = vmatprep.mubr.bf16.mxu0 %v1212_v40  ;;  %v404_v52 = vrot.slane %v402_v38, 5  ;;  %v409_v56 = vrot.slane %v407_v48, 4  ;;  %v1213_v1 = vcombine.low %v1675_v41, %v343_v59  ;;  %v1474_v10 = vld [vmem:[%s1786_s2 + $0xd8] sm:$0xff]   ;;  %v1479_v25 = vld [vmem:[%s1786_s2 + $0x30] sm:$0xff]   ;;  %s1157_s9 = sshll.u32 %s322_s7, 2 }
  0x20   : > { %1368 = vmatpush3.bf16.msra.mxu0 %v1461_v11  ;;  %1329 = vmatprep.subr.bf16.mxu1 %v1462_v18  ;;  %v386_v47 = vrot.slane %v385_v39, 4  ;;  %v400_v54 = vrot.slane %v399_v46, 4  ;;  %v412_v57 = vrot.slane %v410_v49, 5  ;;  %v418_v62 = vrot.slane %v416_v50, 5  ;;  %v1473_v11 = vld [vmem:[%s1786_s2 + $0x18] sm:$0xff]   ;;  %s324_s12 = scalar_lea.vmem %s1787_s3, %s1157_s9  ;;  %s1808_s15 = smov (!%p328_p9, %s1507_s15), 1 }
  0x21   : > { %1369 = vmatprep.subr.bf16.mxu0 %v1463_v29  ;;  %v377_v51 = vsel %vm1667_vm2, %v372_v45, %v376_v30  ;;  %v776_v12 = vshrl.u32 %v343_v59, 16  ;;  %v779_v13 = vshll.u32 %v343_v59, 16  ;;  %v785_v23 = vshll.u32 %v344_v19, 16  ;;  %v1482_v28 = vld [vmem:[%s1786_s2 + $0xf8] sm:$0xff]   ;;  %s1158_s14 = sshll.u32 %s1802_s16, 1 }
  0x22   : > { %v391_v53 = vsel %vm1667_vm2, %v386_v47, %v390_v33  ;;  %v413_v61 = vor.u32 %v412_v57, %v409_v56  ;;  %v405_v63 = vsel %vm1667_vm2, %v400_v54, %v404_v52  ;;  %v1187_v32 = vcombine.low %v1646_v16, %v1675_v41  ;;  %s331_s22 = sadd.s32 %s1158_s14, %s1808_s15 }
  0x23   : > { %1330 = vmatpush3.bf16.msra.mxu1 %v1462_v18  ;;  %v1176_v58 = vcombine.low %v377_v51, %v391_v53  ;;  %v1238_v7 = vcombine.low %v391_v53, %v405_v63  ;;  %v778_v17 = vrot.slane %v776_v12, 4  ;;  %v781_v18 = vrot.slane %v779_v13, 5  ;;  %s1159_s23 = sshll.u32 %s331_s22, 3 }
  0x24   : > { %1370 = vmatpush3.bf16.msra.mxu0 %v1463_v29  ;;  %1331 = vmatprep.subr.bf16.mxu1 %v1464_v43  ;;  %v414_v0 = vrot.slane %v413_v61, 4  ;;  %v787_v27 = vrot.slane %v785_v23, 5  ;;  %v1481_v29 = vld [vmem:[%s1786_s2 + $0x38] sm:$0xff]   ;;  %v912_v33 = vlaneseq  ;;  %v920_v36 = vstv %s1249_s5  ;;  %s333_s8 = scalar_lea.vmem %s1788_s4, %s1159_s23 }
  0x25   : > { %1371 = vmatprep.subr.bf16.mxu0 %v1465_v44  ;;  %1333 = vmatprep.mubr.bf16.mxu1 %v1176_v58  ;;  %v782_v22 = vor.u32 %v781_v18, %v778_v17 }
  0x26   : > { %v419_v3 = vsel %vm1667_vm2, %v414_v0, %v418_v62  ;;  %v913_v35 = vshrl.u32 %v912_v33, 7 }
  0x27   : > { %1332 = vmatpush3.bf16.msra.mxu1 %v1464_v43  ;;  %v1177_v4 = vcombine.low %v405_v63, %v419_v3  ;;  %v783_v26 = vrot.slane %v782_v22, 4 }
  0x28   : > { %1372 = vmatpush3.bf16.msra.mxu0 %v1465_v44  ;;  %1337 = vmatprep.subr.bf16.mxu1 %v1466_v55  ;;  %v915_v34 = vadd.s32 16, %v913_v35  ;;  %v916_v37 = vadd.s32 24, %v913_v35  ;;  %v914_v39 = vadd.s32 8, %v913_v35  ;;  %vm921_vm3 = vcmp.lt.s32.totalorder %v913_v35, %v920_v36 }
  0x29   : > { %1377 = vmatprep.subr.bf16.mxu0 %v1468_v60  ;;  %v788_v30 = vsel %vm1667_vm2, %v783_v26, %v787_v27 }
  0x2a   : > { %1334 = vmatmul.mubr.bf16.vlgmr.msra.gmra.mrb[0].mxu1 %v1177_v4  ;;  %v1239_v31 = vcombine.low %v419_v3, %v788_v30  ;;  %vm923_vm4 = vcmp.lt.s32.totalorder %v915_v34, %v920_v36  ;;  %vm924_vm5 = vcmp.lt.s32.totalorder %v916_v37, %v920_v36  ;;  %vm922_vm6 = vcmp.lt.s32.totalorder %v914_v39, %v920_v36 }
  0x2b   : > { %1374 = vmatmul.mubr.bf16.vlgmr.msra.gmra.mrb[0].mxu0 %v1213_v1  ;;  %1338 = vmatpush3.bf16.msra.mxu1 %v1466_v55 }
  0x2c   : > { %1378 = vmatpush3.bf16.msra.mxu0 %v1468_v60  ;;  %1339 = vmatprep.subr.bf16.mxu1 %v1469_v5 }
  0x2d   : > { %1379 = vmatprep.subr.bf16.mxu0 %v1470_v2  ;;  %1353 = vmatprep.mubr.bf16.mxu1 %v1186_v6 }
  0x2e   : > { %1393 = vmatprep.mubr.bf16.mxu0 %v1238_v7 }
  0x2f   : > { %1340 = vmatpush3.bf16.msra.mxu1 %v1469_v5 }
  0x30   : > { %1380 = vmatpush3.bf16.msra.mxu0 %v1470_v2  ;;  %1341 = vmatprep.subr.bf16.mxu1 %v1471_v9 }
  0x31   : > { %1381 = vmatprep.subr.bf16.mxu0 %v1472_v8 }
  0x33   : > { %1342 = vmatpush3.bf16.msra.mxu1 %v1471_v9 }
  0x34   : > { %1382 = vmatpush3.bf16.msra.mxu0 %v1472_v8  ;;  %1343 = vmatprep.subr.bf16.mxu1 %v1473_v11 }
  0x35   : > { %1383 = vmatprep.subr.bf16.mxu0 %v1474_v10 }
  0x37   : > { %1344 = vmatpush3.bf16.msra.mxu1 %v1473_v11 }
  0x38   : > { %1384 = vmatpush3.bf16.msra.mxu0 %v1474_v10  ;;  %1345 = vmatprep.subr.bf16.mxu1 %v1475_v15 }
  0x39   : > { %1385 = vmatprep.subr.bf16.mxu0 %v1476_v14 }
  0x3b   : > { %1346 = vmatpush3.bf16.msra.mxu1 %v1475_v15 }
  0x3c   : > { %1386 = vmatpush3.bf16.msra.mxu0 %v1476_v14  ;;  %1347 = vmatprep.subr.bf16.mxu1 %v1477_v21 }
  0x3d   : > { %1387 = vmatprep.subr.bf16.mxu0 %v1478_v20 }
  0x3f   : > { %1348 = vmatpush3.bf16.msra.mxu1 %v1477_v21 }
  0x40   : > { %1388 = vmatpush3.bf16.msra.mxu0 %v1478_v20  ;;  %1349 = vmatprep.subr.bf16.mxu1 %v1479_v25 }
  0x41   : > { %1389 = vmatprep.subr.bf16.mxu0 %v1480_v24 }
  0x43   : > { %1350 = vmatpush3.bf16.msra.mxu1 %v1479_v25 }
  0x44   : > { %1390 = vmatpush3.bf16.msra.mxu0 %v1480_v24  ;;  %1351 = vmatprep.subr.bf16.mxu1 %v1481_v29 }
  0x45   : > { %1391 = vmatprep.subr.bf16.mxu0 %v1482_v28 }
  0x47   : > { %1352 = vmatpush3.bf16.msra.mxu1 %v1481_v29 }
  0x48   : > { %1392 = vmatpush3.bf16.msra.mxu0 %v1482_v28 }
  0x4a   : > { %1354 = vmatmul.mubr.bf16.vlgmr.msra.gmra.mrb[0].mxu1 %v1187_v32 }
  0x4b   : > { %1394 = vmatmul.mubr.bf16.vlgmr.msra.gmra.mrb[0].mxu0 %v1239_v31 }
 0x11d   : > { %v1355_v40 = vpop.f32.mrb[0].mxu1 }
 0x11e   : > { %v1395_v38 = vpop.f32.mrb[0].mxu0  ;;  %v636_v16 = vpop.f32.mrb[1].mxu1 }
 0x11f   : > { %v893_v42 = vpop.f32.mrb[1].mxu0  ;;  %v1397_v43 = vadd.f32 %v1395_v38, %v1355_v40  ;;  %v1356_v45 = vpop.f32.mrb[2].mxu1 }
 0x120   : > { %v1396_v41 = vpop.f32.mrb[2].mxu0  ;;  %v1398_v44 = vadd.f32 %v893_v42, %v636_v16  ;;  %v639_v48 = vpop.f32.mrb[3].mxu1 }
 0x121   : > { %v896_v46 = vpop.f32.mrb[3].mxu0  ;;  %v1399_v47 = vadd.f32 %v1396_v41, %v1356_v45  ;;  %v935_v51 = vsel %vm923_vm4, %v1397_v43, 0.0 }
 0x122   : > { %v933_v49 = vsel %vm921_vm3, %v1398_v44, 0.0  ;;  %v1400_v50 = vadd.f32 %v896_v46, %v639_v48  ;;  %v969_v59 = vmul.f32 %v935_v51, %v935_v51 }
 0x123   : > { %v936_v52 = vsel %vm924_vm5, %v1399_v47, 0.0  ;;  %v967_v55 = vmul.f32 %v933_v49, %v933_v49 }
 0x124   : > { %v1274_v53 = vpack.c.bf16 %v936_v52, %v935_v51  ;;  %v934_v54 = vsel %vm922_vm6, %v1400_v50, 0.0  ;;  %v970_v62 = vmul.f32 %v936_v52, %v936_v52 }
 0x125   : > { %v1269_v56 = vpack.c.bf16 %v934_v54, %v933_v49  ;;  %v957_v57 = vadd.f32 %v934_v54, %v933_v49  ;;  %v968_v58 = vmul.f32 %v934_v54, %v934_v54 }
 0x126   : > { %1276 = vst [vmem:[%s324_s12 + $0x8] sm:$0xff] %v1274_v53  }
 0x127   : > { %1270 = vst [vmem:[%s324_s12] sm:$0xff] %v1269_v56   ;;  %v958_v60 = vadd.f32 %v957_v57, %v935_v51  ;;  %v971_v61 = vadd.f32 %v968_v58, %v967_v55 }
 0x129   : > { %v959_v63 = vadd.f32 %v958_v60, %v936_v52  ;;  %v972_v0 = vadd.f32 %v971_v61, %v969_v59 }
 0x12b   : > { %v960_v1 = vrot.slane %v959_v63, 4  ;;  %v973_v2 = vadd.f32 %v972_v0, %v970_v62 }
 0x12d   : > { %v961_v3 = vadd.f32 %v960_v1, %v959_v63  ;;  %v974_v4 = vrot.slane %v973_v2, 4 }
 0x12f   : > { %v962_v5 = vrot.slane %v961_v3, 2  ;;  %v975_v6 = vadd.f32 %v974_v4, %v973_v2 }
 0x131   : > { %v963_v7 = vadd.f32 %v962_v5, %v961_v3  ;;  %v976_v8 = vrot.slane %v975_v6, 2 }
 0x133   : > { %v964_v9 = vrot.slane %v963_v7, 1  ;;  %v977_v10 = vadd.f32 %v976_v8, %v975_v6 }
 0x135   : > { %v965_v11 = vadd.f32 %v964_v9, %v963_v7  ;;  %v978_v12 = vrot.slane %v977_v10, 1 }
 0x137   : > { %966 = vst [vmem:[%s333_s8] sm:$0x1] %v965_v11  ;;  %v979_v13 = vadd.f32 %v978_v12, %v977_v10 }
 0x139   : > { %980 = vst [vmem:[%s333_s8 + $0x1] sm:$0x1] %v979_v13 }
 0x13a PF: > { %s15_s19 = sadd.s32 1, %s1523_s19   ;;  %s1791_s15 = smov %s1515_s17 }
 0x13b   : > { %p12_p10 = scmp.ge.s32.totalorder %s15_s19, 6   ;;  %s1792_s16 = smov %s1519_s18 }
 0x13c   : > { %s1793_s17 = smov %s1796_s20  ;;  %s1794_s18 = smov %s1800_s21 }
 0x13d   :  { %14 = sbr.rel (!%p12_p10) target bundleno = 3 (0x3), region = 80 }

</bundles_post_ra>
